<compile_context>
chip_gen: v7x
topology: tpu7x:2x2x1
jax: 0.10.0
libtpu: 0.0.40
codegen_flags: <defaults>
</compile_context>

<pallas_src>
import functools
import math

import jax
import jax.numpy as jnp
from jax.experimental import pallas as pl
from jax.experimental.pallas import tpu as pltpu

_SQRT_2_OVER_PI = 0.7978845608028654  # sqrt(2/pi)


def _gelu_tanh(h):
    # TODO(synk): torch.nn.GELU() defaults to the exact erf form; this is the
    # tanh approximation (matches GELU(approximate='tanh'), ~1e-3 deviation).
    return 0.5 * h * (1.0 + jnp.tanh(_SQRT_2_OVER_PI * (h + 0.044715 * h * h * h)))


def _ffn_kernel(x_ref, w1_ref, b1_ref, w2_ref, b2_ref, o_ref, acc_ref=None):
    # x_ref:  (TR, D)   bf16 row tile of tokens (block index invariant in j)
    # w1_ref: (D, TH)   bf16 slice of W1^T
    # b1_ref: (1, TH)   f32 slice of b1
    # w2_ref: (TH, D)   bf16 slice of W2^T
    # b2_ref: (1, D)    f32 b2
    # o_ref:  (TR, D)   output row tile (resident across the hidden axis)
    # acc_ref:(TR, D)   optional f32 accumulator scratch (only when o is not f32)
    acc = o_ref if acc_ref is None else acc_ref
    j = pl.program_id(1)  # hidden-tile index (trailing "arbitrary" axis)

    @pl.when(j == 0)
    def _():
        acc[...] = jnp.zeros_like(acc)

    # First matmul: bf16 operands on the MXU, f32 accumulation.
    h = jnp.dot(x_ref[...], w1_ref[...], preferred_element_type=jnp.float32)
    h = h + b1_ref[...]

    # GELU in f32 (v6e/v7x could do this in bf16 on the VPU/EUP; kept f32 so
    # the same kernel is also optimal on v5e, which has no bf16 VPU/EUP).
    h = _gelu_tanh(h)

    # Second matmul: partial contribution of this hidden tile, accumulated f32.
    acc[...] += jnp.dot(h.astype(jnp.bfloat16), w2_ref[...],
                        preferred_element_type=jnp.float32)

    @pl.when(j == pl.num_programs(1) - 1)
    def _():
        o_ref[...] = (acc[...] + b2_ref[...]).astype(o_ref.dtype)


def _round_up(n, m):
    return ((n + m - 1) // m) * m


def _vmem_capacity_bytes():
    try:
        return int(pltpu.get_tpu_info().vmem_capacity_bytes)
    except Exception:
        return 64 * 1024 * 1024  # conservative fallback (v7x per-TC VMEM)


def _vmem_estimate(tr, th, d, out_bytes, use_scratch):
    dbl = 2  # Pallas double-buffers every pipelined block
    total = 0
    total += dbl * tr * d * 2          # x tile (bf16)
    total += dbl * d * th * 2          # W1^T slice (bf16)
    total += dbl * th * 4              # b1 slice (f32)
    total += dbl * th * d * 2          # W2^T slice (bf16)
    total += dbl * d * 4               # b2 (f32)
    total += dbl * tr * d * out_bytes  # output tile
    if use_scratch:
        total += tr * d * 4            # f32 accumulator scratch
    total += tr * th * 4               # f32 hidden intermediate
    total += tr * th * 2               # bf16 hidden operand for 2nd matmul
    return total


@functools.partial(jax.jit, static_argnames=("row_tile", "hidden_tile"))
def feedforward(x, w1_t, b1, w2_t, b2, *, row_tile=512, hidden_tile=512):
    """FeedForward forward pass.

    x: (..., D); w1_t: (D, H) = W1.T; b1: (H,); w2_t: (H, D) = W2.T; b2: (D,).
    """
    # TODO(synk): training-mode dropout (p>0) is not implemented; this matches
    # the module in eval mode / dropout=0.0.
    orig_dtype = x.dtype
    D = x.shape[-1]
    H = w1_t.shape[-1]
    rows = math.prod(x.shape[:-1])

    # ---- hidden (reduction) tile: multiple of 128 dividing the padded H ----
    H128 = _round_up(H, 128)
    th = min(hidden_tile, H128)
    while H128 % th != 0 and th > 128:
        th -= 128
    H_pad = _round_up(H128, th)

    # ---- row tile: large, multiple of 8, >=2 blocks when rows allow it ----
    tr = min(row_tile, _round_up(rows, 8))
    if rows >= 256:
        tr = min(tr, _round_up(pl.cdiv(_round_up(rows, 8), 2), 128))

    out_bytes = jnp.dtype(orig_dtype).itemsize
    use_scratch = jnp.dtype(orig_dtype) != jnp.dtype(jnp.float32)

    # ---- generation-aware VMEM budget and tile fitting ----
    vmem_limit = int(_vmem_capacity_bytes() * 0.8)   # ~51 MiB v7x, ~102 MiB v5e/v6e
    budget = int(vmem_limit * 0.9)
    while _vmem_estimate(tr, th, D, out_bytes, use_scratch) > budget:
        new_th = th - 128
        while new_th >= 128 and H_pad % new_th != 0:
            new_th -= 128
        if new_th >= 128:
            th = new_th
            continue
        if tr > 8:
            tr = max(8, _round_up(tr // 2, 8))
            continue
        break

    padded_rows = _round_up(rows, tr)

    # ---- operand prep: bf16 streaming operands, f32 biases ----
    x2 = x.reshape(rows, D).astype(jnp.bfloat16)
    if padded_rows != rows:
        x2 = jnp.pad(x2, ((0, padded_rows - rows), (0, 0)))

    w1b = w1_t.astype(jnp.bfloat16)
    w2b = w2_t.astype(jnp.bfloat16)
    b1f = b1.astype(jnp.float32)
    b2f = b2.astype(jnp.float32).reshape(1, D)
    if H_pad != H:
        # Zero-pad the hidden dim: padded units see zero weights and zero bias,
        # and their W2^T rows are zero, so they contribute exactly 0.
        w1b = jnp.pad(w1b, ((0, 0), (0, H_pad - H)))
        b1f = jnp.pad(b1f, ((0, H_pad - H),))
        w2b = jnp.pad(w2b, ((0, H_pad - H), (0, 0)))
    b1f = b1f.reshape(1, H_pad)

    grid = (padded_rows // tr, H_pad // th)
    scratch = [pltpu.VMEM((tr, D), jnp.float32)] if use_scratch else []

    out2 = pl.pallas_call(
        _ffn_kernel,
        out_shape=jax.ShapeDtypeStruct((padded_rows, D), orig_dtype),
        grid_spec=pltpu.PrefetchScalarGridSpec(
            num_scalar_prefetch=0,
            grid=grid,
            in_specs=[
                pl.BlockSpec((tr, D), lambda i, j: (i, 0)),   # x row tile (j-invariant)
                pl.BlockSpec((D, th), lambda i, j: (0, j)),   # W1^T hidden slice
                pl.BlockSpec((1, th), lambda i, j: (0, j)),   # b1 hidden slice
                pl.BlockSpec((th, D), lambda i, j: (j, 0)),   # W2^T hidden slice
                pl.BlockSpec((1, D), lambda i, j: (0, 0)),    # b2 (grid-invariant)
            ],
            out_specs=pl.BlockSpec((tr, D), lambda i, j: (i, 0)),
            scratch_shapes=scratch,
        ),
        compiler_params=pltpu.CompilerParams(
            dimension_semantics=("parallel", "arbitrary"),
            vmem_limit_bytes=vmem_limit,
        ),
    )(x2, w1b, b1f, w2b, b2f)

    return out2[:rows].reshape(*x.shape[:-1], D)


def _reference(x, w1_t, b1, w2_t, b2):
    # Same mixed precision as the kernel: bf16 MXU operands, f32 accumulation.
    rows = math.prod(x.shape[:-1])
    xf = x.reshape(rows, x.shape[-1]).astype(jnp.bfloat16)
    h = jnp.dot(xf, w1_t.astype(jnp.bfloat16),
                preferred_element_type=jnp.float32) + b1.astype(jnp.float32)
    h = _gelu_tanh(h)
    y = jnp.dot(h.astype(jnp.bfloat16), w2_t.astype(jnp.bfloat16),
                preferred_element_type=jnp.float32) + b2.astype(jnp.float32)
    return y.reshape(x.shape).astype(x.dtype)


if __name__ == "__main__":
    B, S, D, H = 2, 8, 128, 256

    key = jax.random.PRNGKey(0)
    kx, kw1, kb1, kw2, kb2 = jax.random.split(key, 5)

    x = jax.random.normal(kx, (B, S, D), dtype=jnp.float32)

    # PyTorch nn.Linear stores W as (out, in); we pass W.T as (in, out).
    w1 = jax.random.normal(kw1, (H, D), dtype=jnp.float32) * (1.0 / jnp.sqrt(D))
    b1 = jax.random.normal(kb1, (H,), dtype=jnp.float32) * 0.01
    w2 = jax.random.normal(kw2, (D, H), dtype=jnp.float32) * (1.0 / jnp.sqrt(H))
    b2 = jax.random.normal(kb2, (D,), dtype=jnp.float32) * 0.01

    out = feedforward(x, w1.T, b1, w2.T, b2)
    out = jax.block_until_ready(out)

    ref = _reference(x, w1.T, b1, w2.T, b2)
    assert out.shape == (B, S, D)
    assert jnp.allclose(out, ref, atol=2e-2, rtol=2e-2), "mismatch vs reference"

    print("KERNEL_OK")
</pallas_src>

<mosaic_0001>
module attributes {stable_mosaic.version = 11 : i64} {
  func.func @_ffn_kernel(%arg0: i32, %arg1: i32, %arg2: memref<16x128xbf16, #tpu.memory_space<vmem>>, %arg3: memref<128x256xbf16, #tpu.memory_space<vmem>>, %arg4: memref<1x256xf32, #tpu.memory_space<vmem>>, %arg5: memref<256x128xbf16, #tpu.memory_space<vmem>>, %arg6: memref<1x128xf32, #tpu.memory_space<vmem>>, %arg7: memref<16x128xf32, #tpu.memory_space<vmem>>) attributes {dimension_semantics = [#tpu.dimension_semantics<parallel>, #tpu.dimension_semantics<arbitrary>], iteration_bounds = array<i64: 1, 1>, scalar_prefetch = 0 : i64, scratch_operands = 0 : i64, tpu.core_type = #tpu.core_type<tc>, window_params = [{transform_indices = @transform_0, window_bounds = array<i64: 16, 128>}, {transform_indices = @transform_1, window_bounds = array<i64: 128, 256>}, {transform_indices = @transform_2, window_bounds = array<i64: 1, 256>}, {transform_indices = @transform_3, window_bounds = array<i64: 256, 128>}, {pipeline_mode = #tpu.pipeline_mode<synchronous>, transform_indices = @transform_4, window_bounds = array<i64: 1, 128>}, {transform_indices = @transform_5, window_bounds = array<i64: 16, 128>}]} {
    %c0_i32 = arith.constant 0 : i32
    %0 = arith.cmpi eq, %arg1, %c0_i32 : i32
    %1 = arith.extui %0 : i1 to i32
    %c0_i32_0 = arith.constant 0 : i32
    %2 = arith.cmpi ne, %1, %c0_i32_0 : i32
    scf.if %2 {
      %cst_19 = arith.constant 0.000000e+00 : f32
      %31 = vector.broadcast %cst_19 : f32 to vector<16x128xf32>
      %c0_20 = arith.constant 0 : index
      %c0_21 = arith.constant 0 : index
      %32 = vector.load %arg7[%c0_20, %c0_21] : memref<16x128xf32, #tpu.memory_space<vmem>>, vector<16x128xf32>
      tpu.vector_store %arg7[%c0_20, %c0_21], %31 {strides = array<i32>} : memref<16x128xf32, #tpu.memory_space<vmem>>, vector<16x128xf32>,
    } else {
    }
    %c0 = arith.constant 0 : index
    %c0_1 = arith.constant 0 : index
    %3 = vector.load %arg2[%c0, %c0_1] : memref<16x128xbf16, #tpu.memory_space<vmem>>, vector<16x128xbf16>
    %c0_2 = arith.constant 0 : index
    %c0_3 = arith.constant 0 : index
    %4 = vector.load %arg3[%c0_2, %c0_3] : memref<128x256xbf16, #tpu.memory_space<vmem>>, vector<128x256xbf16>
    %cst = arith.constant dense<0.000000e+00> : vector<16x256xf32>
    %5 = tpu.matmul %3, %4, %cst {dimension_numbers = #tpu.dot_dimension_numbers<[1], [0], [0], [1], [0, 0, 1, 1], [], []>} : vector<16x128xbf16>, vector<128x256xbf16>, vector<16x256xf32> -> vector<16x256xf32>
    %c0_4 = arith.constant 0 : index
    %c0_5 = arith.constant 0 : index
    %6 = vector.load %arg4[%c0_4, %c0_5] : memref<1x256xf32, #tpu.memory_space<vmem>>, vector<1x256xf32>
    %7 = vector.broadcast %6 : vector<1x256xf32> to vector<16x256xf32>
    %8 = arith.addf %5, %7 : vector<16x256xf32>
    %cst_6 = arith.constant 5.000000e-01 : f32
    %9 = vector.broadcast %cst_6 : f32 to vector<16x256xf32>
    %10 = arith.mulf %9, %8 : vector<16x256xf32>
    %cst_7 = arith.constant 4.471500e-02 : f32
    %11 = vector.broadcast %cst_7 : f32 to vector<16x256xf32>
    %12 = arith.mulf %11, %8 : vector<16x256xf32>
    %13 = arith.mulf %12, %8 : vector<16x256xf32>
    %14 = arith.mulf %13, %8 : vector<16x256xf32>
    %15 = arith.addf %8, %14 : vector<16x256xf32>
    %cst_8 = arith.constant 0.797884583 : f32
    %16 = vector.broadcast %cst_8 : f32 to vector<16x256xf32>
    %17 = arith.mulf %16, %15 : vector<16x256xf32>
    %18 = math.tanh %17 : vector<16x256xf32>
    %cst_9 = arith.constant 1.000000e+00 : f32
    %19 = vector.broadcast %cst_9 : f32 to vector<16x256xf32>
    %20 = arith.addf %19, %18 : vector<16x256xf32>
    %21 = arith.mulf %10, %20 : vector<16x256xf32>
    %c0_10 = arith.constant 0 : index
    %c0_11 = arith.constant 0 : index
    %22 = vector.load %arg7[%c0_10, %c0_11] : memref<16x128xf32, #tpu.memory_space<vmem>>, vector<16x128xf32>
    %23 = arith.truncf %21 : vector<16x256xf32> to vector<16x256xbf16>
    %c0_12 = arith.constant 0 : index
    %c0_13 = arith.constant 0 : index
    %24 = vector.load %arg5[%c0_12, %c0_13] : memref<256x128xbf16, #tpu.memory_space<vmem>>, vector<256x128xbf16>
    %cst_14 = arith.constant dense<0.000000e+00> : vector<16x128xf32>
    %25 = tpu.matmul %23, %24, %cst_14 {dimension_numbers = #tpu.dot_dimension_numbers<[1], [0], [0], [1], [0, 0, 1, 1], [], []>} : vector<16x256xbf16>, vector<256x128xbf16>, vector<16x128xf32> -> vector<16x128xf32>
    %26 = arith.addf %22, %25 : vector<16x128xf32>
    %c0_15 = arith.constant 0 : index
    %c0_16 = arith.constant 0 : index
    %27 = vector.load %arg7[%c0_15, %c0_16] : memref<16x128xf32, #tpu.memory_space<vmem>>, vector<16x128xf32>
    tpu.vector_store %arg7[%c0_15, %c0_16], %26 {strides = array<i32>} : memref<16x128xf32, #tpu.memory_space<vmem>>, vector<16x128xf32>,
    %c0_i32_17 = arith.constant 0 : i32
    %28 = arith.cmpi eq, %arg1, %c0_i32_17 : i32
    %29 = arith.extui %28 : i1 to i32
    %c0_i32_18 = arith.constant 0 : i32
    %30 = arith.cmpi ne, %29, %c0_i32_18 : i32
    scf.if %30 {
      %c0_19 = arith.constant 0 : index
      %c0_20 = arith.constant 0 : index
      %31 = vector.load %arg7[%c0_19, %c0_20] : memref<16x128xf32, #tpu.memory_space<vmem>>, vector<16x128xf32>
      %c0_21 = arith.constant 0 : index
      %c0_22 = arith.constant 0 : index
      %32 = vector.load %arg6[%c0_21, %c0_22] : memref<1x128xf32, #tpu.memory_space<vmem>>, vector<1x128xf32>
      %33 = vector.broadcast %32 : vector<1x128xf32> to vector<16x128xf32>
      %34 = arith.addf %31, %33 : vector<16x128xf32>
      %c0_23 = arith.constant 0 : index
      %c0_24 = arith.constant 0 : index
      %35 = vector.load %arg7[%c0_23, %c0_24] : memref<16x128xf32, #tpu.memory_space<vmem>>, vector<16x128xf32>
      tpu.vector_store %arg7[%c0_23, %c0_24], %34 {strides = array<i32>} : memref<16x128xf32, #tpu.memory_space<vmem>>, vector<16x128xf32>,
    } else {
    }
    return
  }
  func.func @transform_0(%arg0: i32, %arg1: i32) -> (i32, i32) {
    %c0_i32 = arith.constant 0 : i32
    %c0_i32_0 = arith.constant 0 : i32
    return %arg0, %c0_i32 : i32, i32
  }
  func.func @transform_1(%arg0: i32, %arg1: i32) -> (i32, i32) {
    %c0_i32 = arith.constant 0 : i32
    %c0_i32_0 = arith.constant 0 : i32
    return %c0_i32, %arg1 : i32, i32
  }
  func.func @transform_2(%arg0: i32, %arg1: i32) -> (i32, i32) {
    %c0_i32 = arith.constant 0 : i32
    %c0_i32_0 = arith.constant 0 : i32
    return %c0_i32, %arg1 : i32, i32
  }
  func.func @transform_3(%arg0: i32, %arg1: i32) -> (i32, i32) {
    %c0_i32 = arith.constant 0 : i32
    %c0_i32_0 = arith.constant 0 : i32
    return %arg1, %c0_i32 : i32, i32
  }
  func.func @transform_4(%arg0: i32, %arg1: i32) -> (i32, i32) {
    %c0_i32 = arith.constant 0 : i32
    %c0_i32_0 = arith.constant 0 : i32
    %c0_i32_1 = arith.constant 0 : i32
    return %c0_i32, %c0_i32_0 : i32, i32
  }
  func.func @transform_5(%arg0: i32, %arg1: i32) -> (i32, i32) {
    %c0_i32 = arith.constant 0 : i32
    %c0_i32_0 = arith.constant 0 : i32
    return %arg0, %c0_i32 : i32, i32
  }
}

</mosaic_0001>

<bundles_post_ra>
// kernel: feedforward.1
= control target key start
LH: loop header
LB: loop body
LE: loop exit
PB: predicated region body
PF: predicated region fallthrough
CT: control target
= control target key end

     0   :  { %v566_v2 = vmov 0   ;;  %s717_s0 = inlined_call_operand.vmem [shape: bf16[16,128], index: 0, kind: input, shape index: {}]   ;;  %s718_s1 = inlined_call_operand.vmem [shape: bf16[128,256], index: 1, kind: input, shape index: {}]   ;;  %s719_s2 = inlined_call_operand.vmem [shape: f32[1,256], index: 2, kind: input, shape index: {}]   ;;  %s720_s3 = inlined_call_operand.vmem [shape: bf16[256,128], index: 3, kind: input, shape index: {}]   ;;  %s721_s4 = inlined_call_operand.vmem [shape: f32[1,128], index: 4, kind: input, shape index: {}]   ;;  %s722_s5 = inlined_call_operand.hbm [shape: f32[16,128], index: 5, kind: output, shape index: {}]  }
   0x1   :  { %v493_v0 = vld [vmem:[%s718_s1 + $0x4] ss:$8 sps:$4 sm:$0xff]   ;;  %v495_v1 = vld [vmem:[%s718_s1] ss:$8 sps:$4 sm:$0xff]   ;;  %176 = vmatprep.mubr.bf16.mxu0 %v566_v2  ;;  %v496_v3 = vld [vmem:[%s718_s1 + $0x14] ss:$8 sps:$4 sm:$0xff]  }
   0x2   :  { %144 = vmatprep.subr.bf16.mxu0 %v493_v0  ;;  %v498_v4 = vld [vmem:[%s718_s1 + $0x10] ss:$8 sps:$4 sm:$0xff]   ;;  %v499_v5 = vld [vmem:[%s718_s1 + $0x24] ss:$8 sps:$4 sm:$0xff]   ;;  %v501_v6 = vld [vmem:[%s718_s1 + $0x20] ss:$8 sps:$4 sm:$0xff]  }
   0x3   :  { %145 = vmatpush1.bf16.msra.mxu0 %v495_v1  ;;  %v502_v7 = vld [vmem:[%s718_s1 + $0x34] ss:$8 sps:$4 sm:$0xff]   ;;  %v504_v8 = vld [vmem:[%s718_s1 + $0x30] ss:$8 sps:$4 sm:$0xff]   ;;  %v505_v9 = vld [vmem:[%s718_s1 + $0x44] ss:$8 sps:$4 sm:$0xff]  }
   0x4   :  { %146 = vmatprep.subr.bf16.mxu0 %v496_v3  ;;  %v507_v10 = vld [vmem:[%s718_s1 + $0x40] ss:$8 sps:$4 sm:$0xff]   ;;  %v508_v11 = vld [vmem:[%s718_s1 + $0x54] ss:$8 sps:$4 sm:$0xff]   ;;  %v510_v12 = vld [vmem:[%s718_s1 + $0x50] ss:$8 sps:$4 sm:$0xff]  }
   0x5   :  { %v511_v13 = vld [vmem:[%s718_s1 + $0x64] ss:$8 sps:$4 sm:$0xff]  }
   0x7   :  { %147 = vmatpush1.bf16.msra.mxu0 %v498_v4 }
   0x8   :  { %148 = vmatprep.subr.bf16.mxu0 %v499_v5 }
   0xb   :  { %149 = vmatpush1.bf16.msra.mxu0 %v501_v6 }
   0xc   :  { %150 = vmatprep.subr.bf16.mxu0 %v502_v7 }
   0xf   :  { %151 = vmatpush1.bf16.msra.mxu0 %v504_v8 }
  0x10   :  { %152 = vmatprep.subr.bf16.mxu0 %v505_v9 }
  0x13   :  { %153 = vmatpush1.bf16.msra.mxu0 %v507_v10 }
  0x14   :  { %154 = vmatprep.subr.bf16.mxu0 %v508_v11 }
  0x15   :  { %10 = vsyncpa [#allocation3], 0  ;;  %v513_v14 = vld [vmem:[%s718_s1 + $0x60] ss:$8 sps:$4 sm:$0xff]   ;;  %v514_v15 = vld [vmem:[%s718_s1 + $0x74] ss:$8 sps:$4 sm:$0xff]   ;;  %v48_v34 = vlaneseq }
  0x16   :  { %v516_v16 = vld [vmem:[%s718_s1 + $0x70] ss:$8 sps:$4 sm:$0xff]   ;;  %v517_v17 = vld [vmem:[%s717_s0] sm:$0xff]   ;;  %v520_v20 = vld [vmem:[%s720_s3 + $0x48] sm:$0xff]   ;;  %s567_s8 = smov [#allocation2]  }
  0x17   :  { %155 = vmatpush1.bf16.msra.mxu0 %v510_v12  ;;  %v518_v18 = vld [vmem:[%s720_s3 + $0x40] sm:$0xff]   ;;  %v521_v21 = vld [vmem:[%s720_s3 + $0x8] sm:$0xff]   ;;  %v522_v22 = vld [vmem:[%s720_s3 + $0x50] sm:$0xff]   ;;  %v49_v35 = vshrl.u32 %v48_v34, 7  ;;  %s421_s0 = sshll.u32 %s567_s8, 4  ;;  %s422_s0 = int_to_ptr.vmem [resolvable:$true] %s421_s0 }
  0x18   :  { %156 = vmatprep.subr.bf16.mxu0 %v511_v13  ;;  %v519_v19 = vld [vmem:[%s720_s3] sm:$0xff]   ;;  %466 = vmatprep.subr.bf16.mxu1 %v518_v18  ;;  %v523_v23 = vld [vmem:[%s720_s3 + $0x10] sm:$0xff]   ;;  %v524_v24 = vld [vmem:[%s720_s3 + $0x58] sm:$0xff]   ;;  %s542_s9 = scalar_lea.vmem %s422_s0, 256  ;;  %p547_p1 = scmp.lt.s32.totalorder %s422_s0, %s422_s0 }
  0x19   :  { %467 = vmatpush3.bf16.msra.mxu1 %v519_v19  ;;  %v525_v25 = vld [vmem:[%s720_s3 + $0x18] sm:$0xff]   ;;  %v526_v26 = vld [vmem:[%s720_s3 + $0x60] sm:$0xff]   ;;  %v528_v28 = vld [vmem:[%s720_s3 + $0x68] sm:$0xff]   ;;  %v50_v36 = vsub.s32 0, %v49_v35  ;;  %v54_v38 = vsub.s32 1, %v49_v35  ;;  %p543_p0 = scmp.ne.s32.totalorder %s422_s0, %s542_s9  ;;  %p548_p2 = scmp.lt.s32.totalorder %s542_s9, %s542_s9 }
  0x1a   :  { %468 = vmatprep.subr.bf16.mxu1 %v520_v20  ;;  %v527_v27 = vld [vmem:[%s720_s3 + $0x20] sm:$0xff]   ;;  %v529_v29 = vld [vmem:[%s720_s3 + $0x28] sm:$0xff]   ;;  %v530_v30 = vld [vmem:[%s720_s3 + $0x70] sm:$0xff]  }
  0x1b   :  { %157 = vmatpush1.bf16.msra.mxu0 %v513_v14  ;;  %v531_v31 = vld [vmem:[%s720_s3 + $0x30] sm:$0xff]   ;;  %v532_v32 = vld [vmem:[%s720_s3 + $0x78] sm:$0xff]   ;;  %v46_v37 = vld [vmem:[%s719_s2] sm:$0x3]  ;;  %p549_p3 = por %p548_p2, %p547_p1 }
  0x1c   :  { %158 = vmatprep.subr.bf16.mxu0 %v514_v15  ;;  %v533_v33 = vld [vmem:[%s720_s3 + $0x38] sm:$0xff]   ;;  %v51_v39 = vrot.slane %v46_v37, %v50_v36  ;;  %v55_v40 = vrot.slane %v46_v37, %v54_v38 }
  0x1d   :  { %469 = vmatpush3.bf16.msra.mxu1 %v521_v21  ;;  %p550_p4 = pnand %p549_p3, %p543_p0 }
  0x1e   :  { %470 = vmatprep.subr.bf16.mxu1 %v522_v22 }
  0x1f   :  { %159 = vmatpush1.bf16.msra.mxu0 %v516_v16 }
  0x21   :  { %471 = vmatpush3.bf16.msra.mxu1 %v523_v23 }
  0x22   :  { %177 = vmatmul.mubr.bf16.vlgmr.msra.gmra.mrb[0].mxu0 %v517_v17  ;;  %472 = vmatprep.subr.bf16.mxu1 %v524_v24 }
  0x25   :  { %473 = vmatpush3.bf16.msra.mxu1 %v525_v25 }
  0x26   :  { %474 = vmatprep.subr.bf16.mxu1 %v526_v26 }
  0x29   :  { %475 = vmatpush3.bf16.msra.mxu1 %v527_v27  ;;  %v465_v27 = vld [vmem:[%s721_s4] ss:$0 sm:$0xff] }
  0x2a   :  { %476 = vmatprep.subr.bf16.mxu1 %v528_v28 }
  0x2d   :  { %477 = vmatpush3.bf16.msra.mxu1 %v529_v29 }
  0x2e   :  { %478 = vmatprep.subr.bf16.mxu1 %v530_v30 }
  0x31   :  { %479 = vmatpush3.bf16.msra.mxu1 %v531_v31 }
  0x32   :  { %480 = vmatprep.subr.bf16.mxu1 %v532_v32 }
  0x35   :  { %481 = vmatpush3.bf16.msra.mxu1 %v533_v33 }
  0xf5   :  { %v178_v41 = vpop.f32.mrb[0].mxu0 }
  0xf6   :  { %v179_v42 = vadd.f32 %v178_v41, %v51_v39  ;;  %v180_v43 = vpop.f32.mrb[1].mxu0 }
  0xf7   :  { %v181_v44 = vadd.f32 %v180_v43, %v55_v40  ;;  %v182_v45 = vpop.f32.mrb[2].mxu0 }
  0xf8   :  { %v191_v46 = vmul.f32 0.044715, %v179_v42  ;;  %v183_v47 = vadd.f32 %v182_v45, %v51_v39  ;;  %v184_v48 = vpop.f32.mrb[3].mxu0  ;;  %v187_v11 = vmul.f32 0.5, %v179_v42 }
  0xf9   :  { %v192_v49 = vmul.f32 0.044715, %v181_v44  ;;  %v185_v50 = vadd.f32 %v184_v48, %v55_v40  ;;  %v188_v14 = vmul.f32 0.5, %v181_v44 }
  0xfa   :  { %v195_v51 = vmul.f32 %v191_v46, %v179_v42  ;;  %v193_v52 = vmul.f32 0.044715, %v183_v47  ;;  %v189_v12 = vmul.f32 0.5, %v183_v47 }
  0xfb   :  { %v194_v53 = vmul.f32 0.044715, %v185_v50  ;;  %v196_v54 = vmul.f32 %v192_v49, %v181_v44  ;;  %v190_v15 = vmul.f32 0.5, %v185_v50 }
  0xfc   :  { %v199_v55 = vmul.f32 %v195_v51, %v179_v42  ;;  %v197_v56 = vmul.f32 %v193_v52, %v183_v47 }
  0xfd   :  { %v198_v57 = vmul.f32 %v194_v53, %v185_v50  ;;  %v200_v58 = vmul.f32 %v196_v54, %v181_v44 }
  0xfe   :  { %v201_v59 = vmul.f32 %v197_v56, %v183_v47  ;;  %v203_v60 = vadd.f32 %v199_v55, %v179_v42 }
  0xff   :  { %v202_v61 = vmul.f32 %v198_v57, %v185_v50  ;;  %v204_v62 = vadd.f32 %v200_v58, %v181_v44 }
 0x100   :  { %v205_v63 = vadd.f32 %v201_v59, %v183_v47  ;;  %v207_v0 = vmul.f32 0.7978846, %v203_v60 }
 0x101   :  { %v206_v1 = vadd.f32 %v202_v61, %v185_v50  ;;  %v208_v2 = vmul.f32 0.7978846, %v204_v62 }
 0x102   :  { %v209_v3 = vmul.f32 0.7978846, %v205_v63  ;;  %534 = vtanh.f32 %v207_v0 }
 0x103   :  { %v210_v4 = vmul.f32 0.7978846, %v206_v1  ;;  %536 = vtanh.f32 %v208_v2 }
 0x104   :  { %538 = vtanh.f32 %v209_v3 }
 0x105   :  { %540 = vtanh.f32 %v210_v4 }
 0x10c   :  { %v535_v5 = vpop.eup %534 }
 0x10d   :  { %v537_v6 = vpop.eup %536  ;;  %v215_v7 = vadd.f32 1.0, %v535_v5 }
 0x10e   :  { %v539_v8 = vpop.eup %538  ;;  %v216_v9 = vadd.f32 1.0, %v537_v6 }
 0x10f   :  { %v541_v10 = vpop.eup %540  ;;  %v217_v13 = vadd.f32 1.0, %v539_v8  ;;  %v219_v17 = vmul.f32 %v215_v7, %v187_v11 }
 0x110   :  { %v218_v16 = vadd.f32 1.0, %v541_v10  ;;  %v220_v19 = vmul.f32 %v216_v9, %v188_v14 }
 0x111   :  { %v221_v18 = vmul.f32 %v217_v13, %v189_v12 }
 0x112   :  { %v222_v20 = vmul.f32 %v218_v16, %v190_v15 }
 0x113   :  { %v225_v21 = vpack.c.bf16 %v221_v18, %v219_v17 }
 0x114   :  { %v226_v22 = vpack.c.bf16 %v222_v20, %v220_v19 }
 0x116   :  { %387 = vmatprep.mubr.bf16.mxu1 %v226_v22 }
 0x117   :  { %388 = vmatmul.mubr.bf16.vlgmr.msra.gmra.mrb[0].mxu1 %v225_v21 }
 0x1ea   :  { %v482_v23 = vpop.f32.mrb[0].mxu1 }
 0x1eb   :  { %v483_v24 = vpop.f32.mrb[1].mxu1 }
 0x1ec   :  { %v484_v25 = vadd.f32 %v483_v24, %v482_v23  ;;  %v485_v26 = vpop.f32.mrb[2].mxu1 }
 0x1ed   :  { %v486_v28 = vpop.f32.mrb[3].mxu1 }
 0x1ee   :  { %v487_v29 = vadd.f32 %v486_v28, %v485_v26  ;;  %v412_v30 = vadd.f32 %v484_v25, %v465_v27 }
 0x1f0   :  { %414 = vst [vmem:[#allocation2] sm:$0xff] %v412_v30  ;;  %v413_v31 = vadd.f32 %v487_v29, %v465_v27 }
 0x1f2   :  { %415 = vst [vmem:[#allocation2 + $0x8] sm:$0xff] %v413_v31 }
 0x1f3   :  { %553 = shalt.err (!%p550_p4)
}
 0x1f4   :  { %s554_s4 = scalar_lea.hbm %s722_s5, 256 }
 0x1f5   :  { %p555_p5 = scmp.ne.s32.totalorder %s722_s5, %s554_s4  ;;  %p558_p6 = scmp.lt.u32.totalorder %s554_s4, %s722_s5 }
 0x1f7   :  { %p560_p7 = pnand %p558_p6, %p555_p5 }
 0x1f9   :  { %563 = shalt.err (!%p560_p7)
}
 0x1fa   :  { %s568_s16 = smov 128   ;;  %s569_s17 = smov 8  }
 0x1fb   :  { %427 = dma.vmem_to_hbm [thread:$0]  %s422_s0, 256, %s722_s5, [#allocation3], %s568_s16, %s568_s16, %s569_s17  }
 0x1fc   :  { %564 = dma.done.wait [#allocation3], 256  }
 0x1fd   :  { %565 = vsyncadd [#allocation3], 4294967040 }
 0x1fe   :  { %431 = vsyncpa [#allocation3], 1 }

</bundles_post_ra>
